<compile_context>
chip_gen: v5e
topology: v5e:2x2
jax: 0.10.0
libtpu: 0.0.40
codegen_flags: <defaults>
</compile_context>

<pallas_src>
import jax
import jax.numpy as jnp
from jax.experimental import pallas as pl
from jax.experimental.pallas import tpu as pltpu

EPS = 1e-5  # nn.InstanceNorm1d default eps


def cin_kernel(x_ref, g_ref, b_ref, o_ref):
    # x_ref : (TC, L)   channel tile of one batch instance
    # g_ref : (TC, 1)   gamma column for this tile
    # b_ref : (TC, 1)   beta  column for this tile
    # o_ref : (TC, L)
    x = x_ref[...].astype(jnp.float32)            # (TC, L)
    inv_l = jnp.float32(1.0 / x.shape[1])

    # One-pass statistics over the lane (L) axis.
    s1 = jnp.sum(x, axis=1, keepdims=True)        # (TC, 1)
    s2 = jnp.sum(x * x, axis=1, keepdims=True)    # (TC, 1)
    mean = s1 * inv_l
    var = s2 * inv_l - mean * mean
    rstd = jax.lax.rsqrt(jnp.maximum(var, 0.0) + EPS)   # clamp vs cancellation

    gamma = g_ref[...].astype(jnp.float32)        # (TC, 1)
    beta = b_ref[...].astype(jnp.float32)         # (TC, 1)

    # (1 + gamma) * (x - mean) * rstd + beta  ==  x * scale + shift
    scale = (1.0 + gamma) * rstd                  # (TC, 1)
    shift = beta - mean * scale                   # (TC, 1)
    o_ref[...] = (x * scale + shift).astype(o_ref.dtype)


def _pick_channel_tile(C, L, itemsize=4, max_block_bytes=2 << 20):
    """Channel tile: multiple of 8, <= 256, block <= ~2 MiB; full C if ragged."""
    if C % 8 != 0:
        return C  # block must equal the full dim when C isn't 8-aligned
    cap = max(8, min(256, max_block_bytes // max(1, L * itemsize)))
    cap = max(8, (cap // 8) * 8)
    return min(C, cap)


def conditional_instance_norm(x, c, weight, bias):
    """x: (B, C, L), c: (B, n_cond),
    weight: (2C, n_cond), bias: (2C,)  -- as in nn.Linear(n_cond, 2C)."""
    B, C, L = x.shape

    # Hoisted conditioning Linear (tiny GEMM, let XLA handle it once for all B).
    h = c @ weight.T + bias                    # (B, 2C)
    gamma = h[:, :C][:, :, None]               # (B, C, 1)
    beta = h[:, C:][:, :, None]                # (B, C, 1)

    TC = _pick_channel_tile(C, L, itemsize=x.dtype.itemsize)
    grid = (B, pl.cdiv(C, TC))

    xspec = pl.BlockSpec((pl.Squeezed(), TC, L), lambda b, ct: (b, ct, 0))
    vspec = pl.BlockSpec((pl.Squeezed(), TC, 1), lambda b, ct: (b, ct, 0))

    cost = pl.CostEstimate(
        flops=5 * B * C * L,
        transcendentals=B * C,
        bytes_accessed=2 * B * C * L * x.dtype.itemsize,
    )

    return pl.pallas_call(
        cin_kernel,
        out_shape=jax.ShapeDtypeStruct((B, C, L), x.dtype),
        grid_spec=pltpu.PrefetchScalarGridSpec(
            num_scalar_prefetch=0,
            grid=grid,
            in_specs=[xspec, vspec, vspec],
            out_specs=xspec,
        ),
        compiler_params=pltpu.CompilerParams(
            dimension_semantics=("parallel", "parallel"),
            vmem_limit_bytes=32 * 1024 * 1024,
        ),
        cost_estimate=cost,
    )(x, gamma, beta)


def reference(x, c, weight, bias):
    # Pure-JAX reference mirroring the PyTorch forward.
    B, C, L = x.shape
    h = c @ weight.T + bias                          # (B, 2C)
    gamma = h[:, :C][:, :, None]                     # (B, C, 1)
    beta = h[:, C:][:, :, None]                      # (B, C, 1)
    mean = x.mean(axis=2, keepdims=True)
    var = ((x - mean) ** 2).mean(axis=2, keepdims=True)
    xhat = (x - mean) / jnp.sqrt(var + EPS)
    return (1.0 + gamma) * xhat + beta


if __name__ == "__main__":
    B, C, L, n_cond = 2, 4, 16, 8

    key = jax.random.PRNGKey(0)
    kx, kc, kw, kb = jax.random.split(key, 4)

    x = jax.random.normal(kx, (B, C, L), dtype=jnp.float32)
    c = jax.random.normal(kc, (B, n_cond), dtype=jnp.float32)

    # Deterministic nn.Linear(n_cond, 2*C)-style init.
    bound = 1.0 / jnp.sqrt(jnp.float32(n_cond))
    weight = jax.random.uniform(kw, (2 * C, n_cond), jnp.float32, -bound, bound)
    bias = jax.random.uniform(kb, (2 * C,), jnp.float32, -bound, bound)

    out = conditional_instance_norm(x, c, weight, bias)
    out = jax.block_until_ready(out)

    ref = reference(x, c, weight, bias)
    assert out.shape == (B, C, L)
    assert jnp.allclose(out, ref, atol=1e-4, rtol=1e-4), "mismatch vs reference"

    print("KERNEL_OK")
</pallas_src>

<mosaic_0001>
module attributes {stable_mosaic.version = 11 : i64} {
  func.func @cin_kernel(%arg0: i32, %arg1: i32, %arg2: memref<1x4x16xf32, #tpu.memory_space<vmem>>, %arg3: memref<1x4x1xf32, #tpu.memory_space<vmem>>, %arg4: memref<1x4x1xf32, #tpu.memory_space<vmem>>, %arg5: memref<1x4x16xf32, #tpu.memory_space<vmem>>) attributes {dimension_semantics = [#tpu.dimension_semantics<parallel>, #tpu.dimension_semantics<parallel>], iteration_bounds = array<i64: 2, 1>, scalar_prefetch = 0 : i64, scratch_operands = 0 : i64, tpu.core_type = #tpu.core_type<tc>, window_params = [{transform_indices = @transform_0, window_bounds = array<i64: 1, 4, 16>}, {transform_indices = @transform_1, window_bounds = array<i64: 1, 4, 1>}, {transform_indices = @transform_2, window_bounds = array<i64: 1, 4, 1>}, {transform_indices = @transform_3, window_bounds = array<i64: 1, 4, 16>}]} {
    %c0 = arith.constant 0 : index
    %c0_0 = arith.constant 0 : index
    %c0_1 = arith.constant 0 : index
    %0 = vector.load %arg2[%c0, %c0_0, %c0_1] : memref<1x4x16xf32, #tpu.memory_space<vmem>>, vector<1x4x16xf32>
    %1 = vector.shape_cast %0 : vector<1x4x16xf32> to vector<4x16xf32>
    %cst = arith.constant dense<0.000000e+00> : vector<4xf32>
    %2 = vector.multi_reduction <add>, %1, %cst [1] : vector<4x16xf32> to vector<4xf32>
    %3 = vector.shape_cast %2 : vector<4xf32> to vector<4x1xf32>
    %4 = arith.mulf %1, %1 : vector<4x16xf32>
    %cst_2 = arith.constant dense<0.000000e+00> : vector<4xf32>
    %5 = vector.multi_reduction <add>, %4, %cst_2 [1] : vector<4x16xf32> to vector<4xf32>
    %6 = vector.shape_cast %5 : vector<4xf32> to vector<4x1xf32>
    %cst_3 = arith.constant 6.250000e-02 : f32
    %7 = vector.broadcast %cst_3 : f32 to vector<4x1xf32>
    %8 = arith.mulf %3, %7 : vector<4x1xf32>
    %cst_4 = arith.constant 6.250000e-02 : f32
    %9 = vector.broadcast %cst_4 : f32 to vector<4x1xf32>
    %10 = arith.mulf %6, %9 : vector<4x1xf32>
    %11 = arith.mulf %8, %8 : vector<4x1xf32>
    %12 = arith.subf %10, %11 : vector<4x1xf32>
    %cst_5 = arith.constant 0.000000e+00 : f32
    %13 = vector.broadcast %cst_5 : f32 to vector<4x1xf32>
    %14 = arith.maximumf %12, %13 : vector<4x1xf32>
    %cst_6 = arith.constant 9.99999974E-6 : f32
    %15 = vector.broadcast %cst_6 : f32 to vector<4x1xf32>
    %16 = arith.addf %14, %15 : vector<4x1xf32>
    %17 = math.rsqrt %16 : vector<4x1xf32>
    %c0_7 = arith.constant 0 : index
    %c0_8 = arith.constant 0 : index
    %c0_9 = arith.constant 0 : index
    %18 = vector.load %arg3[%c0_7, %c0_8, %c0_9] : memref<1x4x1xf32, #tpu.memory_space<vmem>>, vector<1x4x1xf32>
    %19 = vector.shape_cast %18 : vector<1x4x1xf32> to vector<4x1xf32>
    %c0_10 = arith.constant 0 : index
    %c0_11 = arith.constant 0 : index
    %c0_12 = arith.constant 0 : index
    %20 = vector.load %arg4[%c0_10, %c0_11, %c0_12] : memref<1x4x1xf32, #tpu.memory_space<vmem>>, vector<1x4x1xf32>
    %21 = vector.shape_cast %20 : vector<1x4x1xf32> to vector<4x1xf32>
    %cst_13 = arith.constant 1.000000e+00 : f32
    %22 = vector.broadcast %cst_13 : f32 to vector<4x1xf32>
    %23 = arith.addf %22, %19 : vector<4x1xf32>
    %24 = arith.mulf %23, %17 : vector<4x1xf32>
    %25 = arith.mulf %8, %24 : vector<4x1xf32>
    %26 = arith.subf %21, %25 : vector<4x1xf32>
    %27 = vector.broadcast %24 : vector<4x1xf32> to vector<4x16xf32>
    %28 = arith.mulf %1, %27 : vector<4x16xf32>
    %29 = vector.broadcast %26 : vector<4x1xf32> to vector<4x16xf32>
    %30 = arith.addf %28, %29 : vector<4x16xf32>
    %c0_14 = arith.constant 0 : index
    %c0_15 = arith.constant 0 : index
    %c0_16 = arith.constant 0 : index
    %31 = vector.load %arg5[%c0_14, %c0_15, %c0_16] : memref<1x4x16xf32, #tpu.memory_space<vmem>>, vector<1x4x16xf32>
    %32 = vector.shape_cast %31 : vector<1x4x16xf32> to vector<4x16xf32>
    %33 = vector.shape_cast %30 : vector<4x16xf32> to vector<1x4x16xf32>
    tpu.vector_store %arg5[%c0_14, %c0_15, %c0_16], %33 {strides = array<i32>} : memref<1x4x16xf32, #tpu.memory_space<vmem>>, vector<1x4x16xf32>,
    return
  }
  func.func @transform_0(%arg0: i32, %arg1: i32) -> (i32, i32, i32) {
    %c0_i32 = arith.constant 0 : i32
    %c0_i32_0 = arith.constant 0 : i32
    return %arg0, %arg1, %c0_i32 : i32, i32, i32
  }
  func.func @transform_1(%arg0: i32, %arg1: i32) -> (i32, i32, i32) {
    %c0_i32 = arith.constant 0 : i32
    %c0_i32_0 = arith.constant 0 : i32
    return %arg0, %arg1, %c0_i32 : i32, i32, i32
  }
  func.func @transform_2(%arg0: i32, %arg1: i32) -> (i32, i32, i32) {
    %c0_i32 = arith.constant 0 : i32
    %c0_i32_0 = arith.constant 0 : i32
    return %arg0, %arg1, %c0_i32 : i32, i32, i32
  }
  func.func @transform_3(%arg0: i32, %arg1: i32) -> (i32, i32, i32) {
    %c0_i32 = arith.constant 0 : i32
    %c0_i32_0 = arith.constant 0 : i32
    return %arg0, %arg1, %c0_i32 : i32, i32, i32
  }
}

</mosaic_0001>

<bundles_post_ra>
// kernel: tpu_custom_call.1
= control target key start
LH: loop header
LB: loop body
LE: loop exit
PB: predicated region body
PF: predicated region fallthrough
CT: control target
= control target key end

     0   :  { %8 = vsyncpa [#allocation3], 0  ;;  %s694_s0 = inlined_call_operand.vmem [shape: f32[2,4,16], index: 0, kind: input, shape index: {}]   ;;  %s695_s1 = inlined_call_operand.vmem [shape: f32[2,4,1], index: 1, kind: input, shape index: {}]   ;;  %s696_s2 = inlined_call_operand.vmem [shape: f32[2,4,1], index: 2, kind: input, shape index: {}]   ;;  %s697_s3 = inlined_call_operand.hbm [shape: f32[2,4,16], index: 3, kind: output, shape index: {}]  }
   0x1   :  { %10 = vsyncpa [#allocation3 + $0x1], 0  ;;  %s583_s12 = smov 0   ;;  %s585_s13 = smov 0  }
   0x2   :  { %s587_s14 = smov 0   ;;  %s589_s15 = smov 0  }
   0x3   :  { %s591_s16 = smov 0   ;;  %s593_s17 = smov 0  }
   0x4 LB: > { %s409_s18 = sadd.s32 4294967295, %s560_s17   ;;  %s410_s19 = sadd.s32 4294967294, %s560_s17   ;;  %s560_s17 = sphi %s593_s17, %s16_s17   ;;  %s556_s16 = sphi %s591_s16, %s704_s16   ;;  %s552_s15 = sphi %s589_s15, %s703_s15   ;;  %s548_s14 = sphi %s587_s14, %s702_s14   ;;  %s544_s13 = sphi %s585_s13, %s701_s13   ;;  %s540_s12 = sphi %s583_s12, %s700_s12  }
   0x5   : > { %s28_s20 = sadd.s32 1, %s556_s16  ;;  %s121_s21 = sadd.s32 1, %s548_s14 }
   0x6   : > { %p30_p0 = scmp.ge.s32.totalorder %s28_s20, 2  ;;  %p131_p1 = scmp.ne.s32.totalorder %s548_s14, %s544_s13 }
   0x7   : > { %p132_p2 = scmp.eq.s32.totalorder %s409_s18, 1  ;;  %p137_p3 = scmp.ne.s32.totalorder %s544_s13, %s540_s12 }
   0x8   : > { %s706_s20 = smov (%p30_p0, %s28_s20), 0  ;;  %p138_p5 = scmp.eq.s32.totalorder %s410_s19, 1 }
   0x9   : > { %p623_p4 = por %p132_p2, %p131_p1  ;;  %s116_s23 = ssub.s32 %s556_s16, %s706_s20 }
   0xa   : > { %p413_p6 = scmp.ge.s32.totalorder %s560_s17, 1  ;;  %p119_p7 = scmp.eq.s32.totalorder %s116_s23, 0 }
   0xb   : > { %p630_p8 = por %p138_p5, %p137_p3  ;;  %p186_p9 = scmp.lt.s32.totalorder %s560_s17, 3 }
   0xc   : > { %s636_s25 = scalar_select %p119_p7, %s548_s14, %s121_s21  }
   0xd   : > { %p187_p10 = pnand %p413_p6, %p186_p9 }
   0xe   : > { %p226_p11 = scmp.lt.s32.totalorder (!%p187_p10), %s552_s15, 1  ;;  %s223_s10 = sand.u32 (!%p187_p10), 1, %s544_s13  }
   0xf   : > { %190 = sbr.rel (%p187_p10) target bundleno = 306 (0x132), region = 32  ;;  %s414_s11 = sshll.u32 (!%p187_p10), %s223_s10, 2 }
  0x10   : > { %s419_s18 = sshll.u32 (!%p187_p10), %s552_s15, 2 }
  0x11   : > { %s303_s23 = scalar_lea.hbm (!%p187_p10), %s697_s3, %s419_s18 }
  0x12   : > { %s307_s29 = sshll.u32 (!%p187_p10), %s303_s23, 4  ;;  %s308_s29 = int_to_ptr.hbm [resolvable:$true] %s307_s29 }
  0x14   : > { %s227_s26 = scalar_select %p226_p11, %s552_s15, 1  ;;  %vm248_vm0 = vcmask 125952   ;;  %v562_v4 = vmov 0  }
  0x15   : > { %478 = vset.pattern.permute.xlu1 %v562_v4  ;;  %479 = vset.pattern.permute.xlu0 %v562_v4 }
  0x16   : > { %s640_s27 = sshll.u32 %s227_s26, 2  ;;  %s225_s26 = scalar_lea.vmem [#allocation2], %s414_s11 }
  0x17   : > { %s232_s30 = scalar_lea.vmem %s694_s0, %s640_s27  ;;  %s239_s6 = scalar_lea.vmem %s695_s1, %s640_s27 }
  0x18   : > { %v247_v0 = vld [vmem:[%s232_s30] sm:$0xf]  ;;  %s246_s9 = scalar_lea.vmem %s696_s2, %s640_s27  ;;  %s305_s28 = sshll.u32 %s225_s26, 4  ;;  %s306_s28 = int_to_ptr.vmem [resolvable:$true] %s305_s28 }
  0x19   : > { %v249_v1 = vsel %vm248_vm0, %v247_v0, 0.0  ;;  %v252_v2 = vmul.f32 %v247_v0, %v247_v0  ;;  %v272_v17 = vld [vmem:[%s239_s6] sm:$0xf]  ;;  %s292_s27 = scalar_lea.sflag [#allocation3], %s223_s10  ;;  %s496_s30 = sshra.s32 %s308_s29, 4  ;;  %s497_s30 = int_to_ptr.hbm [resolvable:$true] %s496_s30 }
  0x1a   : > { %250 = vadd.xlane.f32.xlu0 %v249_v1  ;;  %v274_v19 = vadd.f32 1.0, %v272_v17  ;;  %v273_v24 = vld [vmem:[%s246_s9] sm:$0xf]  ;;  %s498_s4 = scalar_lea.hbm %s497_s30, 4  ;;  %s502_s6 = scalar_lea.hbm %s697_s3, 8 }
  0x1b   : > { %v253_v3 = vsel %vm248_vm0, %v252_v2, 0.0  ;;  %p499_p12 = scmp.ne.s32.totalorder %s497_s30, %s498_s4  ;;  %p503_p1 = scmp.lt.s32.totalorder %s497_s30, %s697_s3 }
  0x1c   : > { %p504_p2 = scmp.lt.s32.totalorder %s502_s6, %s498_s4 }
  0x1d   : > { %p500_p13 = pnand %p499_p12, %p623_p4 }
  0x1e   : > { %p505_p3 = por %p504_p2, %p503_p1 }
  0x1f   : > { %p501_p0 = pneg %p500_p13 }
  0x21   : > { %p506_p5 = pnand %p505_p3, %p501_p0 }
  0x22   : > { %254 = vadd.xlane.f32.xlu0 %v253_v3 }
  0x8d   : > { %v251_v5 = vpop.xlane.xlu0 %250 }
  0x8e   : > { %v256_v6 = vmul.f32 0.0625, %v251_v5 }
  0x90   : > { %v258_v8 = vmul.f32 %v256_v6, %v256_v6 }
  0x95   : > { %v255_v7 = vpop.xlane.xlu0 %254 }
  0x96   : > { %v257_v9 = vmul.f32 0.0625, %v255_v7 }
  0x98   : > { %v259_v10 = vsub.f32 %v257_v9, %v258_v8 }
  0x9a   : > { %v260_v11 = vmax.f32 %v259_v10, 0.0 }
  0x9c   : > { %v261_v12 = vadd.f32 1e-05, %v260_v11 }
  0x9e   : > { %480 = vrsqrt.f32 %v261_v12  ;;  %vm268_vm2 = vweird.f32 %v261_v12 }
  0xa4   : > { %v481_v13 = vpop.eup %480 }
  0xa5   : > { %v263_v14 = vmul.f32 %v481_v13, %v261_v12  ;;  %vm269_vm1 = vweird.f32 %v481_v13 }
  0xa6   : > { %vm270_vm3 = vmor %vm268_vm2, %vm269_vm1 }
  0xa7   : > { %v264_v15 = vmul.f32 %v481_v13, %v263_v14 }
  0xa9   : > { %v265_v16 = vmul.f32 0.5, %v264_v15 }
  0xab   : > { %v266_v18 = vsub.f32 1.5, %v265_v16 }
  0xad   : > { %v267_v20 = vmul.f32 %v481_v13, %v266_v18 }
  0xaf   : > { %v271_v21 = vsel %vm270_vm3, %v481_v13, %v267_v20 }
  0xb0   : > { %v275_v22 = vmul.f32 %v274_v19, %v271_v21 }
  0xb2   : > { %280 = vperm.xlu1 %478, %v275_v22   ;;  %v276_v23 = vmul.f32 %v275_v22, %v256_v6 }
  0xb4   : > { %v277_v25 = vsub.f32 %v273_v24, %v276_v23 }
  0xba   : > { %286 = vperm.xlu1 %478, %v277_v25  }
 0x124   : > { %v281_v26 = vpop.permute.xlu1 %280 }
 0x125   : > { %v283_v27 = vmul.f32 %v281_v26, %v247_v0 }
 0x12c   : > { %v287_v28 = vpop.permute.xlu1 %286 }
 0x12d   : > { %v289_v29 = vadd.f32 %v287_v28, %v283_v27 }
 0x12f   : > { %290 = vst.msk [vmem:[%s225_s26] sm:$0xf] %vm248_vm0, %v289_v29 }
 0x130   : > { %509 = shalt.err (!%p506_p5)
}
 0x131   : > { %422 = dma.vmem_to_hbm [thread:$0]  (%p623_p4), %s306_s28, 64, %s308_s29, %s292_s27  }
 0x132 PF: > { %p428_p6 = scmp.ge.s32.totalorder %s560_s17, 2  ;;  %s319_s9 = sand.u32 1, %s540_s12  }
 0x133   : > { %s320_s10 = scalar_lea.sflag [#allocation3], %s319_s9 }
 0x134   : > { %p425_p7 = pnand %p428_p6, %p630_p8 }
 0x136   : > { %p426_p9 = pneg %p425_p7 }
 0x138   : > { %535 = dma.done.wait (%p426_p9), %s320_s10, 64  }
 0x139   : > { %537 = vsyncadd (%p426_p9), %s320_s10, 4294967232  ;;  %s16_s17 = sadd.s32 1, %s560_s17   ;;  %s700_s12 = smov %s544_s13 }
 0x13a   : > { %p13_p10 = scmp.ge.s32.totalorder %s16_s17, 4   ;;  %s701_s13 = smov %s548_s14 }
 0x13b   : > { %s702_s14 = smov %s636_s25  ;;  %s703_s15 = smov %s556_s16 }
 0x13c   : > { %s704_s16 = smov %s706_s20  ;;  %15 = sbr.rel (!%p13_p10) target bundleno = 4 (0x4), region = 73 }
 0x141   :  { %326 = vsyncpa [#allocation3], 1 }
 0x142   :  { %328 = vsyncpa [#allocation3 + $0x1], 1 }

</bundles_post_ra>
